<compile_context>
chip_gen: v6e
topology: v6e:2x2x1
jax: 0.10.0
libtpu: 0.0.40
codegen_flags: <defaults>
</compile_context>

<pallas_src>
import numpy as np
import jax
import jax.numpy as jnp
from jax.experimental import pallas as pl
from jax.experimental.pallas import tpu as pltpu


def _bilinear_matrix(out_size: int, in_size: int) -> np.ndarray:
    """Matrix M of shape (out, in) such that M @ x reproduces
    F.interpolate(mode='bilinear', align_corners=False) along one axis."""
    m = np.zeros((out_size, in_size), dtype=np.float32)
    if in_size == 1:
        m[:, 0] = 1.0
        return m
    scale = in_size / out_size
    for i in range(out_size):
        src = max((i + 0.5) * scale - 0.5, 0.0)
        i0 = min(int(np.floor(src)), in_size - 1)
        i1 = min(i0 + 1, in_size - 1)
        lam1 = src - i0
        m[i, i0] += 1.0 - lam1
        m[i, i1] += lam1
    return m


def _vmem_limits():
    """Generation-aware (scoped_vmem_limit_bytes, block_budget_bytes)."""
    phys = 64 * 1024 * 1024                       # conservative default (v7x)
    try:
        info = pltpu.get_tpu_info()
        phys = int(getattr(info, "vmem_capacity_bytes", phys))
    except Exception:
        pass
    # ~70% of physical VMEM: ~45 MiB on v7x (64 MiB), ~90 MiB on v5e/v6e (128 MiB).
    scoped = max(16 * 1024 * 1024, min(int(phys * 0.70), 100 * 1024 * 1024))
    # Leave ~20% of the scoped limit for the small gate block + compiler scratch.
    block_budget = int(scoped * 0.80)
    return int(scoped), int(block_budget)


def _pick_channel_tile(C: int, hw: int, itemsize: int, budget_bytes: int) -> int:
    """Largest dtype-aligned channel tile whose double-buffered curr+out blocks
    fit the block budget."""
    align = max(8, 32 // max(itemsize, 1))        # 8 rows f32, 16 bf16, 32 int8
    per_channel = 2 * 2 * hw * itemsize           # curr + out blocks, 2x buffered
    tc = int(budget_bytes // max(per_channel, 1))
    if tc >= C:
        return C
    tc = max(align, (tc // align) * align)        # dtype-aware sublane alignment
    t = tc
    while t > align and C % t != 0:               # prefer tiles that divide C
        t -= align
    if C % t == 0:
        tc = t
    return max(1, min(tc, C))


def _gate_kernel(excite_temp: float):
    def kernel(w_ref, rh_ref, rwt_ref, b_ref, prev_ref, gate_ref):
        # 1x1-conv channel reduction FIRST (no Hc inflation, no folded matrix):
        #   (C,1,1) * (C,Hp,Wp) summed over C -> (Hp,Wp) in f32.
        r = jnp.sum(w_ref[...] * prev_ref[...], axis=0)
        # Height resize: (Hc,Hp) @ (Hp,Wp) -> (Hc,Wp)
        a = jnp.dot(rh_ref[...], r, preferred_element_type=jnp.float32)
        # Width resize: (Hc,Wp) @ (Wp,Wc) -> (Hc,Wc)
        pre = jnp.dot(a, rwt_ref[...], preferred_element_type=jnp.float32)
        gate_ref[...] = jax.nn.sigmoid(excite_temp * (pre + b_ref[0]))
    return kernel


def _gating_kernel(gate_ref, curr_ref, out_ref):
    # gate_ref: (1, Hc*Wc); curr_ref/out_ref: (TC, Hc*Wc) in activation dtype.
    out_ref[...] = (curr_ref[...] * gate_ref[...]).astype(out_ref.dtype)


def trc_forward(curr_feat, prev_feat, curr_shape, prev_shape,
                conv_w, conv_b, excite_temp=1.0):
    """TRC forward, is_conv=True (default) path.

    curr_feat: (B, L, C)  with L  = Hc*Wc
    prev_feat: (B, Lp, C) with Lp = Hp*Wp
    conv_w:    (1, C, 1, 1) 1x1-conv weight
    conv_b:    (1,)         1x1-conv bias
    """
    B, L, C = curr_feat.shape
    Hc, Wc = curr_shape
    Hp, Wp = prev_shape
    hw = Hc * Wc

    # torch .view(-1, C, H, W): raw row-major reshapes (NOT permutes) -> free.
    prev4d = prev_feat.reshape(B, C, Hp, Wp)
    curr_flat = curr_feat.reshape(B, C, hw)        # lane-dense (B, C, Hc*Wc)

    rh = jnp.asarray(_bilinear_matrix(Hc, Hp))                 # (Hc, Hp)
    rwt = jnp.asarray(_bilinear_matrix(Wc, Wp).T)              # (Wp, Wc)
    w3 = conv_w.reshape(C, 1, 1).astype(jnp.float32)           # (C, 1, 1)
    bias = conv_b.reshape(1).astype(jnp.float32)

    scoped_vmem, block_budget = _vmem_limits()

    # ---- kernel 1: per-batch gate map (channel reduce -> resize -> sigmoid) --
    gate = pl.pallas_call(
        _gate_kernel(float(excite_temp)),
        out_shape=jax.ShapeDtypeStruct((B, Hc, Wc), jnp.float32),
        grid=(B,),
        in_specs=[
            pl.BlockSpec((C, 1, 1), lambda b: (0, 0, 0)),              # conv w
            pl.BlockSpec((Hc, Hp), lambda b: (0, 0)),                  # Rh
            pl.BlockSpec((Wp, Wc), lambda b: (0, 0)),                  # Rw^T
            pl.BlockSpec(memory_space=pltpu.MemorySpace.SMEM),         # bias
            pl.BlockSpec((None, C, Hp, Wp), lambda b: (b, 0, 0, 0)),   # prev
        ],
        out_specs=pl.BlockSpec((None, Hc, Wc), lambda b: (b, 0, 0)),
        compiler_params=pltpu.CompilerParams(
            dimension_semantics=("parallel",),
            vmem_limit_bytes=scoped_vmem),
    )(w3, rh, rwt, bias, prev4d)

    # Flatten + cast the gate outside the kernels (raw reshape is free; the
    # cast keeps the big gating multiply in the activation dtype).
    gate_flat = gate.astype(curr_feat.dtype).reshape(B, 1, hw)

    # ---- kernel 2: lane-dense, channel-tiled gating multiply -----------------
    tc = _pick_channel_tile(C, hw, jnp.dtype(curr_feat.dtype).itemsize,
                            block_budget)
    num_ct = pl.cdiv(C, tc)

    out_flat = pl.pallas_call(
        _gating_kernel,
        out_shape=jax.ShapeDtypeStruct((B, C, hw), curr_feat.dtype),
        grid=(B, num_ct),
        in_specs=[
            pl.BlockSpec((None, 1, hw), lambda b, ct: (b, 0, 0)),      # gate
            pl.BlockSpec((None, tc, hw), lambda b, ct: (b, ct, 0)),    # curr tile
        ],
        out_specs=pl.BlockSpec((None, tc, hw), lambda b, ct: (b, ct, 0)),
        compiler_params=pltpu.CompilerParams(
            dimension_semantics=("parallel", "parallel"),
            vmem_limit_bytes=scoped_vmem),
    )(gate_flat, curr_flat)

    # torch output_tensor.reshape((B, L, C)): raw reshape again.
    return out_flat.reshape(B, L, C)


def trc_reference(curr_feat, prev_feat, curr_shape, prev_shape,
                  conv_w, conv_b, excite_temp):
    """Pure-JAX reference mirroring the PyTorch forward (is_conv=True)."""
    B, L, C = curr_feat.shape
    Hc, Wc = curr_shape
    Hp, Wp = prev_shape
    prev = prev_feat.reshape(B, C, Hp, Wp)
    curr = curr_feat.reshape(B, C, Hc, Wc)
    rh = jnp.asarray(_bilinear_matrix(Hc, Hp))
    rw = jnp.asarray(_bilinear_matrix(Wc, Wp))
    resized = jnp.einsum('hp,bcpq,wq->bchw', rh, prev, rw)
    pre = jnp.einsum('bchw,c->bhw', resized, conv_w.reshape(C)) + conv_b.reshape(())
    gate = jax.nn.sigmoid(excite_temp * pre)[:, None, :, :]
    return (curr * gate).reshape(B, L, C)


if __name__ == "__main__":
    key = jax.random.PRNGKey(0)
    k1, k2, k3, k4 = jax.random.split(key, 4)

    B, C = 2, 4
    Hc = Wc = 16
    Hp = Wp = 8
    L, Lp = Hc * Wc, Hp * Wp
    excite_temp = 2.0

    curr_feat = jax.random.normal(k1, (B, L, C), jnp.float32)
    prev_feat = jax.random.normal(k2, (B, Lp, C), jnp.float32)
    # Deterministic synthetic parameters (nn.Conv2d(C, 1, kernel_size=1, bias=True)).
    conv_w = 0.1 * jax.random.normal(k3, (1, C, 1, 1), jnp.float32)
    conv_b = 0.05 * jax.random.normal(k4, (1,), jnp.float32)

    out = trc_forward(curr_feat, prev_feat, (Hc, Wc), (Hp, Wp),
                      conv_w, conv_b, excite_temp)
    out = jax.block_until_ready(out)

    ref = trc_reference(curr_feat, prev_feat, (Hc, Wc), (Hp, Wp),
                        conv_w, conv_b, excite_temp)
    assert out.shape == (B, L, C)
    np.testing.assert_allclose(np.asarray(out), np.asarray(ref),
                               rtol=1e-5, atol=1e-5)
    print("KERNEL_OK")
</pallas_src>

<mosaic_0001>
module attributes {stable_mosaic.version = 11 : i64} {
  func.func @kernel(%arg0: i32, %arg1: memref<4x1x1xf32, #tpu.memory_space<vmem>>, %arg2: memref<16x8xf32, #tpu.memory_space<vmem>>, %arg3: memref<8x16xf32, #tpu.memory_space<vmem>>, %arg4: memref<1xf32, #tpu.memory_space<smem>>, %arg5: memref<1x4x8x8xf32, #tpu.memory_space<vmem>>, %arg6: memref<1x16x16xf32, #tpu.memory_space<vmem>>) attributes {dimension_semantics = [#tpu.dimension_semantics<parallel>], iteration_bounds = array<i64: 2>, scalar_prefetch = 0 : i64, scratch_operands = 0 : i64, tpu.core_type = #tpu.core_type<tc>, window_params = [{pipeline_mode = #tpu.pipeline_mode<synchronous>, transform_indices = @transform_0, window_bounds = array<i64: 4, 1, 1>}, {pipeline_mode = #tpu.pipeline_mode<synchronous>, transform_indices = @transform_1, window_bounds = array<i64: 16, 8>}, {pipeline_mode = #tpu.pipeline_mode<synchronous>, transform_indices = @transform_2, window_bounds = array<i64: 8, 16>}, {transform_indices = @transform_3, window_bounds = array<i64: 1>}, {transform_indices = @transform_4, window_bounds = array<i64: 1, 4, 8, 8>}, {transform_indices = @transform_5, window_bounds = array<i64: 1, 16, 16>}]} {
    %c0 = arith.constant 0 : index
    %c0_0 = arith.constant 0 : index
    %c0_1 = arith.constant 0 : index
    %0 = vector.load %arg1[%c0, %c0_0, %c0_1] : memref<4x1x1xf32, #tpu.memory_space<vmem>>, vector<4x1x1xf32>
    %c0_2 = arith.constant 0 : index
    %c0_3 = arith.constant 0 : index
    %c0_4 = arith.constant 0 : index
    %c0_5 = arith.constant 0 : index
    %1 = vector.load %arg5[%c0_2, %c0_3, %c0_4, %c0_5] : memref<1x4x8x8xf32, #tpu.memory_space<vmem>>, vector<1x4x8x8xf32>
    %2 = vector.shape_cast %1 : vector<1x4x8x8xf32> to vector<4x8x8xf32>
    %3 = vector.broadcast %0 : vector<4x1x1xf32> to vector<4x8x8xf32>
    %4 = arith.mulf %3, %2 : vector<4x8x8xf32>
    %cst = arith.constant dense<0.000000e+00> : vector<8x8xf32>
    %5 = vector.multi_reduction <add>, %4, %cst [0] : vector<4x8x8xf32> to vector<8x8xf32>
    %c0_6 = arith.constant 0 : index
    %c0_7 = arith.constant 0 : index
    %6 = vector.load %arg2[%c0_6, %c0_7] : memref<16x8xf32, #tpu.memory_space<vmem>>, vector<16x8xf32>
    %cst_8 = arith.constant dense<0.000000e+00> : vector<16x8xf32>
    %7 = tpu.matmul %6, %5, %cst_8 {dimension_numbers = #tpu.dot_dimension_numbers<[1], [0], [0], [1], [0, 0, 1, 1], [], []>} : vector<16x8xf32>, vector<8x8xf32>, vector<16x8xf32> -> vector<16x8xf32>
    %c0_9 = arith.constant 0 : index
    %c0_10 = arith.constant 0 : index
    %8 = vector.load %arg3[%c0_9, %c0_10] : memref<8x16xf32, #tpu.memory_space<vmem>>, vector<8x16xf32>
    %cst_11 = arith.constant dense<0.000000e+00> : vector<16x16xf32>
    %9 = tpu.matmul %7, %8, %cst_11 {dimension_numbers = #tpu.dot_dimension_numbers<[1], [0], [0], [1], [0, 0, 1, 1], [], []>} : vector<16x8xf32>, vector<8x16xf32>, vector<16x16xf32> -> vector<16x16xf32>
    %c0_12 = arith.constant 0 : index
    %10 = memref.load %arg4[%c0_12] : memref<1xf32, #tpu.memory_space<smem>>
    %11 = vector.broadcast %10 : f32 to vector<16x16xf32>
    %12 = arith.addf %9, %11 : vector<16x16xf32>
    %cst_13 = arith.constant 2.000000e+00 : f32
    %13 = vector.broadcast %cst_13 : f32 to vector<16x16xf32>
    %14 = arith.mulf %13, %12 : vector<16x16xf32>
    %15 = arith.negf %14 : vector<16x16xf32>
    %16 = math.exp %15 : vector<16x16xf32>
    %cst_14 = arith.constant 1.000000e+00 : f32
    %17 = vector.broadcast %cst_14 : f32 to vector<16x16xf32>
    %18 = arith.addf %17, %16 : vector<16x16xf32>
    %19 = arith.divf %17, %18 : vector<16x16xf32>
    %c0_15 = arith.constant 0 : index
    %c0_16 = arith.constant 0 : index
    %c0_17 = arith.constant 0 : index
    %20 = vector.load %arg6[%c0_15, %c0_16, %c0_17] : memref<1x16x16xf32, #tpu.memory_space<vmem>>, vector<1x16x16xf32>
    %21 = vector.shape_cast %20 : vector<1x16x16xf32> to vector<16x16xf32>
    %22 = vector.shape_cast %19 : vector<16x16xf32> to vector<1x16x16xf32>
    tpu.vector_store %arg6[%c0_15, %c0_16, %c0_17], %22 {strides = array<i32>} : memref<1x16x16xf32, #tpu.memory_space<vmem>>, vector<1x16x16xf32>,
    return
  }
  func.func @transform_0(%arg0: i32) -> (i32, i32, i32) {
    %c0_i32 = arith.constant 0 : i32
    %c0_i32_0 = arith.constant 0 : i32
    %c0_i32_1 = arith.constant 0 : i32
    %c0_i32_2 = arith.constant 0 : i32
    return %c0_i32, %c0_i32_0, %c0_i32_1 : i32, i32, i32
  }
  func.func @transform_1(%arg0: i32) -> (i32, i32) {
    %c0_i32 = arith.constant 0 : i32
    %c0_i32_0 = arith.constant 0 : i32
    %c0_i32_1 = arith.constant 0 : i32
    return %c0_i32, %c0_i32_0 : i32, i32
  }
  func.func @transform_2(%arg0: i32) -> (i32, i32) {
    %c0_i32 = arith.constant 0 : i32
    %c0_i32_0 = arith.constant 0 : i32
    %c0_i32_1 = arith.constant 0 : i32
    return %c0_i32, %c0_i32_0 : i32, i32
  }
  func.func @transform_3(%arg0: i32) -> i32 {
    %c0_i32 = arith.constant 0 : i32
    %c0_i32_0 = arith.constant 0 : i32
    return %c0_i32 : i32
  }
  func.func @transform_4(%arg0: i32) -> (i32, i32, i32, i32) {
    %c0_i32 = arith.constant 0 : i32
    %c0_i32_0 = arith.constant 0 : i32
    %c0_i32_1 = arith.constant 0 : i32
    %c0_i32_2 = arith.constant 0 : i32
    return %arg0, %c0_i32, %c0_i32_0, %c0_i32_1 : i32, i32, i32, i32
  }
  func.func @transform_5(%arg0: i32) -> (i32, i32, i32) {
    %c0_i32 = arith.constant 0 : i32
    %c0_i32_0 = arith.constant 0 : i32
    %c0_i32_1 = arith.constant 0 : i32
    return %arg0, %c0_i32, %c0_i32_0 : i32, i32, i32
  }
}

</mosaic_0001>

<bundles_post_ra>
// kernel: tpu_custom_call.1
= control target key start
LH: loop header
LB: loop body
LE: loop exit
PB: predicated region body
PF: predicated region fallthrough
CT: control target
= control target key end

     0   :  { %s992_s0 = inlined_call_operand.vmem [shape: f32[4,1,1], index: 0, kind: input, shape index: {}]   ;;  %s993_s1 = inlined_call_operand.vmem [shape: f32[16,8], index: 1, kind: input, shape index: {}]   ;;  %s994_s2 = inlined_call_operand.vmem [shape: f32[8,16], index: 2, kind: input, shape index: {}]   ;;  %s995_s3 = inlined_call_operand.<no memory space> [shape: f32[1], index: 3, kind: input, shape index: {}]   ;;  %s996_s4 = inlined_call_operand.hbm [shape: f32[2,4,8,8], index: 4, kind: input, shape index: {}]   ;;  %s997_s5 = inlined_call_operand.hbm [shape: f32[2,16,16], index: 5, kind: output, shape index: {}]  }
   0x1   :  { %10 = sst [smem:[#allocation2]] %s995_s3 }
   0x2   :  { %11 = vsyncpa [#allocation4], 0 }
   0x3   :  { %13 = vsyncpa [#allocation4 + $0x1], 0 }
   0x4   :  { %14 = vsyncpa [#allocation5], 0 }
   0x5   :  { %16 = vsyncpa [#allocation5 + $0x1], 0  ;;  %s808_s20 = smov 0   ;;  %s810_s21 = smov 0  }
   0x6   :  { %s812_s22 = smov 0   ;;  %s814_s23 = smov 0  }
   0x7 LB: > { %s829_s3 = sadd.s32 4294967295, %s766_s23   ;;  %s571_s24 = sadd.s32 4294967294, %s766_s23   ;;  %s766_s23 = sphi %s814_s23, %s1012_s23   ;;  %s762_s22 = sphi %s812_s22, %s1011_s22   ;;  %s758_s21 = sphi %s810_s21, %s1010_s21   ;;  %s754_s20 = sphi %s808_s20, %s1009_s20  }
   0x8   : > { %s833_s25 = sadd.s32 1, %s766_s23   ;;  %s113_s26 = sadd.s32 1, %s762_s22 }
   0x9   : > { %s110_s27 = ssub.s32 %s766_s23, %s833_s25  ;;  %p120_p0 = scmp.ne.s32.totalorder %s762_s22, %s758_s21 }
   0xa   : > { %p111_p1 = scmp.eq.s32.totalorder %s110_s27, 0  ;;  %p121_p2 = scmp.eq.s32.totalorder %s766_s23, 0 }
   0xb   : > { %p126_p3 = scmp.ne.s32.totalorder %s758_s21, %s754_s20  ;;  %p127_p4 = scmp.eq.s32.totalorder %s829_s3, 0 }
   0xc   : > { %s845_s28 = scalar_select %p111_p1, %s762_s22, %s113_s26  }
   0xd   : > { %p847_p5 = por %p121_p2, %p120_p0  ;;  %p851_p6 = por %p127_p4, %p126_p3 }
   0xe   : > { %p150_p7 = scmp.eq.s32.totalorder %s829_s3, 1  ;;  %p156_p8 = scmp.eq.s32.totalorder %s571_s24, 1 }
   0xf   : > { %s1001_s30 = scalar_select %p851_p6, 1, 0 }
  0x10   : > { %p625_p10 = scmp.lt.s32.totalorder %s766_s23, 2  ;;  %p858_p11 = por %p150_p7, %p120_p0 }
  0x11   : > { %p862_p12 = por %p156_p8, %p126_p3  ;;  %s188_s8 = sand.u32 1, %s762_s22  }
  0x12   : > { %s1002_s6 = scalar_select %p858_p11, 1, 0 }
  0x13   : > { %s1003_s7 = scalar_select %p862_p12, 1, 0 }
  0x14   : > { %s595_s9 = sshll.u32 %s766_s23, 9  ;;  %s574_s10 = sshll.u32 %s188_s8, 5 }
  0x15   : > { %s871_s13 = scalar_lea.hbm %s996_s4, %s595_s9  ;;  %s192_s14 = scalar_lea.vmem [#allocation3], %s574_s10 }
  0x16   : > { %s199_s15 = sshll.u32 %s192_s14, 4  ;;  %p875_p13 = pnand %p625_p10, %p847_p5  ;;  %s879_s15 = int_to_ptr.vmem [resolvable:$true] %s199_s15 }
  0x17   : > { %s881_s17 = scalar_lea.sflag [#allocation4], %s188_s8  ;;  %s674_s18 = scalar_lea.hbm %s871_s13, 512 }
  0x18   : > { %p675_p0 = scmp.ne.s32.totalorder %s871_s13, %s674_s18  ;;  %p676_p1 = pneg %p875_p13 }
  0x19   : > { %s679_s26 = scalar_lea.hbm %s996_s4, 1024  ;;  %p680_p4 = scmp.lt.s32.totalorder %s871_s13, %s996_s4 }
  0x1a   : > { %p677_p2 = pnand %p676_p1, %p675_p0  ;;  %p681_p5 = scmp.lt.s32.totalorder %s679_s26, %s674_s18 }
  0x1c   : > { %p678_p3 = pneg %p677_p2  ;;  %p682_p7 = por %p681_p5, %p680_p4 }
  0x1e   : > { %p683_p8 = pnand %p682_p7, %p678_p3 }
  0x20   : > { %686 = shalt.err (!%p683_p8)
}
  0x21   : > { %s687_s8 = scalar_lea.vmem %s879_s15, 512  ;;  %s768_s9 = smov [#allocation3]  }
  0x22   : > { %p688_p10 = scmp.ne.s32.totalorder %s879_s15, %s687_s8  ;;  %s692_s10 = sshll.u32 %s768_s9, 4  ;;  %s693_s10 = int_to_ptr.vmem [resolvable:$false] %s692_s10 }
  0x23   : > { %s694_s11 = scalar_lea.vmem %s693_s10, 1024  ;;  %p695_p2 = scmp.lt.s32.totalorder %s879_s15, %s693_s10 }
  0x24   : > { %p690_p9 = pnand %p688_p10, %p676_p1  ;;  %p696_p12 = scmp.lt.s32.totalorder %s694_s11, %s687_s8 }
  0x26   : > { %p691_p0 = pneg %p690_p9  ;;  %p697_p11 = por %p696_p12, %p695_p2 }
  0x28   : > { %p698_p6 = pnand %p697_p11, %p691_p0 }
  0x2a   : > { %701 = shalt.err (!%p698_p6)
}
  0x2b   : > { %s769_s12 = smov 128   ;;  %s770_s14 = smov 8  }
  0x2c   : > { %620 = dma.hbm_to_vmem [thread:$0]  (!%p875_p13), %s871_s13, 512, %s879_s15, %s881_s17, %s769_s12, %s769_s12, %s770_s14  }
  0x2d   : > { %p577_p9 = scmp.ge.s32.totalorder %s766_s23, 1  ;;  %p207_p1 = scmp.lt.s32.totalorder %s766_s23, 3 }
  0x2f   : > { %p208_p3 = pnand %p577_p9, %p207_p1 }
  0x30   : > { %s905_s18 = sand.u32 (!%p208_p3), 1, %s758_s21   ;;  %p1005_p6 = scmp.ne.s32.totalorder (!%p208_p3), %s1001_s30, 0 }
  0x31   : > { %211 = sbr.rel (%p208_p3) target bundleno = 637 (0x27d), region = 40  ;;  %s578_s19 = sshll.u32 (!%p208_p3), %s905_s18, 5 }
  0x32   : > { %s214_s24 = scalar_lea.sflag (!%p208_p3), [#allocation4], %s905_s18  ;;  %s217_s26 = scalar_lea.vmem (!%p208_p3), [#allocation3], %s578_s19 }
  0x36   : > { %745 = dma.done.wait (%p1005_p6), %s214_s24, 512  }
  0x37   : > { %747 = vsyncadd (%p1005_p6), %s214_s24, 4294966784  ;;  %v771_v0 = vmov 0   ;;  %v582_v1 = vld [vmem:[%s992_s0 + $0x2] ss:$0 sm:$0xff]  ;;  %v580_v2 = vld [vmem:[%s992_s0] ss:$0 sm:$0xff] }
  0x38   : > { %665 = vset.pattern.permute.xlu1 %v771_v0  ;;  %664 = vset.pattern.permute.xlu0 %v771_v0  ;;  %v583_v3 = vld [vmem:[%s992_s0 + $0x3] ss:$0 sm:$0xff]  ;;  %v581_v4 = vld [vmem:[%s992_s0 + $0x1] ss:$0 sm:$0xff]  ;;  %vm292_vm0 = vcmask 64512   ;;  %v250_v9 = vld [vmem:[%s217_s26 + $0x10] sm:$0xff] }
  0x39   : > { %281 = vperm.xlu1 %665, %v582_v1   ;;  %273 = vperm.xlu0 %664, %v580_v2   ;;  %v300_v5 = vld [vmem:[%s993_s1] sm:$0xff]  ;;  %v249_v10 = vld [vmem:[%s217_s26 + $0x8] sm:$0xff]  ;;  %v251_v12 = vld [vmem:[%s217_s26 + $0x18] sm:$0xff]  ;;  %s384_s24 = sld [smem:[#allocation2]]  ;;  %s596_s13 = sshll.u32 %s829_s3, 8  ;;  %vm481_vm1 = vcmask 130048  }
  0x3a   : > { %605 = vmatprep.mubr.msk.f32.mxu0 %vm292_vm0, %v300_v5  ;;  %v248_v7 = vld [vmem:[%s217_s26] sm:$0xff]  ;;  %v301_v25 = vld [vmem:[%s993_s1 + $0x8] sm:$0xff]  ;;  %s579_s26 = sshll.u32 %s905_s18, 4  ;;  %s947_s29 = scalar_lea.hbm %s997_s5, %s596_s13 }
  0x3b   : > { %v383_v26 = vld [vmem:[%s994_s2] sm:$0xff]  ;;  %s243_s15 = scalar_lea.vmem [#allocation6], %s579_s26  ;;  %s485_s8 = scalar_lea.sflag [#allocation5], %s905_s18 }
  0x3c   : > { %608 = vmatprep.subr.mxu1 %v383_v26  ;;  %s498_s16 = sshll.u32 %s243_s15, 4  ;;  %p1006_p12 = scmp.ne.s32.totalorder %s1002_s6, 0  ;;  %s949_s16 = int_to_ptr.vmem [resolvable:$true] %s498_s16 }
  0x3d   : > { %285 = vperm.xlu1 %665, %v583_v3   ;;  %277 = vperm.xlu0 %664, %v581_v4   ;;  %s702_s30 = scalar_lea.vmem %s949_s16, 256  ;;  %s772_s3 = smov [#allocation6]  }
  0x3e   : > { %609 = vmatpush3.msra.mxu1 %v383_v26  ;;  %p703_p11 = scmp.ne.s32.totalorder %s949_s16, %s702_s30  ;;  %s706_s9 = sshll.u32 %s772_s3, 4  ;;  %s707_s9 = int_to_ptr.vmem [resolvable:$false] %s706_s9 }
  0x3f   : > { %v385_v29 = vstv %s384_s24  ;;  %s708_s10 = scalar_lea.vmem %s707_s9, 512  ;;  %p709_p5 = scmp.lt.s32.totalorder %s949_s16, %s707_s9 }
  0x40   : > { %p704_p13 = pnand %p703_p11, %p1006_p12  ;;  %p710_p7 = scmp.lt.s32.totalorder %s708_s10, %s702_s30 }
  0x42   : > { %p705_p4 = pneg %p704_p13  ;;  %p711_p8 = por %p710_p7, %p709_p5 }
  0x44   : > { %p712_p10 = pnand %p711_p8, %p705_p4 }
  0xb4   : > { %v282_v6 = vpop.permute.xlu1 %281  ;;  %v274_v8 = vpop.permute.xlu0 %273 }
  0xb5   : > { %v288_v11 = vmul.f32 %v274_v8, %v248_v7  ;;  %v290_v15 = vmul.f32 %v282_v6, %v250_v9 }
  0xb7   : > { %v293_v17 = vsel %vm292_vm0, %v288_v11, 0.0  ;;  %v296_v21 = vsel %vm292_vm0, %v290_v15, 0.0 }
  0xb8   : > { %v286_v13 = vpop.permute.xlu1 %285  ;;  %v278_v14 = vpop.permute.xlu0 %277 }
  0xb9   : > { %v289_v16 = vmul.f32 %v278_v14, %v249_v10  ;;  %v291_v18 = vmul.f32 %v286_v13, %v251_v12 }
  0xbb   : > { %v294_v19 = vsel %vm292_vm0, %v289_v16, 0.0  ;;  %v298_v23 = vsel %vm292_vm0, %v291_v18, 0.0 }
  0xbc   : > { %v295_v20 = vadd.f32 %v294_v19, %v293_v17 }
  0xbe   : > { %v297_v22 = vadd.f32 %v296_v21, %v295_v20 }
  0xc0   : > { %v299_v24 = vadd.f32 %v298_v23, %v297_v22 }
  0xc2   : > { %603 = vmatprep.subr.mxu0 %v299_v24 }
  0xc3   : > { %604 = vmatpush3.msra.mxu0 %v299_v24 }
  0xc4   : > { %606 = vmatmul.mubr.msk.f32.vlgmr.msra.gmra.mxu0 %vm292_vm0, %v301_v25 }
 0x184   : > { %v607_v27 = vpop.f32.mrf.mxu0 }
 0x186   : > { %v374_v28 = vpop.f32.mrf.mxu0 }
 0x187   : > { %610 = vmatprep.mubr.msk.f32.mxu1 %vm292_vm0, %v374_v28 }
 0x188   : > { %611 = vmatmul.mubr.msk.f32.vlgmr.msra.gmra.mxu1 %vm292_vm0, %v607_v27 }
 0x248   : > { %v612_v30 = vpop.f32.mrf.mxu1 }
 0x249   : > { %v464_v31 = vadd.f32 %v612_v30, %v385_v29 }
 0x24a   : > { %v458_v32 = vpop.f32.mrf.mxu1 }
 0x24b   : > { %v589_v33 = vmul.f32 -2.0, %v464_v31  ;;  %v459_v34 = vadd.f32 %v458_v32, %v385_v29 }
 0x24d   : > { %v473_v35 = vmul.f32 1.442695, %v589_v33  ;;  %v588_v36 = vmul.f32 -2.0, %v459_v34 }
 0x24f   : > { %666 = vpow2.f32 %v473_v35  ;;  %v471_v37 = vmul.f32 1.442695, %v588_v36 }
 0x251   : > { %668 = vpow2.f32 %v471_v37 }
 0x25c   : > { %v667_v38 = vpop.eup %666 }
 0x25d   : > { %v476_v39 = vadd.f32 1.0, %v667_v38 }
 0x25e   : > { %v669_v40 = vpop.eup %668 }
 0x25f   : > { %670 = vrcp.f32 %v476_v39  ;;  %v475_v41 = vadd.f32 1.0, %v669_v40 }
 0x261   : > { %672 = vrcp.f32 %v475_v41 }
 0x26c   : > { %v671_v42 = vpop.eup %670 }
 0x26d   : > { %483 = vst.msk [vmem:[%s243_s15 + $0x8] sm:$0xff] %vm481_vm1, %v671_v42 }
 0x26e   : > { %v673_v43 = vpop.eup %672 }
 0x26f   : > { %482 = vst.msk [vmem:[%s243_s15] sm:$0xff] %vm481_vm1, %v673_v43 }
 0x270   : > { %715 = shalt.err (!%p712_p10)
}
 0x271   : > { %s716_s11 = scalar_lea.hbm %s947_s29, 256  ;;  %s720_s19 = scalar_lea.hbm %s997_s5, 512 }
 0x272   : > { %p717_p0 = scmp.ne.s32.totalorder %s947_s29, %s716_s11  ;;  %p721_p1 = scmp.lt.s32.totalorder %s947_s29, %s997_s5 }
 0x273   : > { %p722_p3 = scmp.lt.s32.totalorder %s720_s19, %s716_s11 }
 0x274   : > { %p718_p2 = pnand %p717_p0, %p1006_p12 }
 0x275   : > { %p723_p6 = por %p722_p3, %p721_p1 }
 0x276   : > { %p719_p9 = pneg %p718_p2 }
 0x278   : > { %p724_p11 = pnand %p723_p6, %p719_p9 }
 0x27a   : > { %727 = shalt.err (!%p724_p11)
}
 0x27b   : > { %s773_s13 = smov 128   ;;  %s774_s15 = smov 8  }
 0x27c   : > { %615 = dma.vmem_to_hbm [thread:$0]  (%p1006_p12), %s949_s16, 256, %s947_s29, %s485_s8, %s773_s13, %s773_s13, %s774_s15  }
 0x27d PF: > { %s513_s17 = sand.u32 1, %s754_s20   ;;  %p1007_p13 = scmp.ne.s32.totalorder %s1003_s7, 0 }
 0x27e   : > { %p1008_p4 = scmp.ge.s32.totalorder %s766_s23, 2  ;;  %s514_s27 = scalar_lea.sflag [#allocation5], %s513_s17 }
 0x280   : > { %p622_p5 = pnand %p1008_p4, %p1007_p13 }
 0x282   : > { %p623_p7 = pneg %p622_p5 }
 0x284   : > { %749 = dma.done.wait (%p623_p7), %s514_s27, 256  }
 0x285   : > { %751 = vsyncadd (%p623_p7), %s514_s27, 4294967040  ;;  %p19_p8 = scmp.ge.s32.totalorder %s833_s25, 4   ;;  %s1009_s20 = smov %s758_s21 }
 0x286   : > { %s1010_s21 = smov %s762_s22  ;;  %s1011_s22 = smov %s845_s28 }
 0x287   : > { %s1012_s23 = smov %s833_s25  ;;  %21 = sbr.rel (!%p19_p8) target bundleno = 7 (0x7), region = 85 }
 0x28c   :  { %519 = vsyncpa [#allocation4], 1 }
 0x28d   :  { %521 = vsyncpa [#allocation4 + $0x1], 1 }
 0x28e   :  { %522 = vsyncpa [#allocation5], 1 }
 0x28f   :  { %524 = vsyncpa [#allocation5 + $0x1], 1 }

</bundles_post_ra>
